<compile_context>
chip_gen: v6e
topology: v6e:2x2x1
jax: 0.10.0
libtpu: 0.0.40
codegen_flags: <defaults>
</compile_context>

<pallas_src>
import jax
import jax.numpy as jnp
from jax.experimental import pallas as pl
from jax.experimental.pallas import tpu as pltpu


def expand_toeplitz(diag, lower_diags, upper_diags):
    """JAX equivalent of the torch expand_toeplitz: T[i, j] = pattern[d - i + j]."""
    pattern = jnp.concatenate([upper_diags, diag, lower_diags], axis=0)
    d = lower_diags.shape[0]
    i = jnp.arange(d + 1)
    idx = d - i[:, None] + i[None, :]
    return pattern[idx]


def fold_layers(mats):
    """Compose T_{L-1} @ ... @ T_0 in f32 (== ToeplitzNet.matrix()). Param setup."""
    combined = mats[0]
    for i in range(1, mats.shape[0]):
        combined = jnp.dot(mats[i], combined, preferred_element_type=jnp.float32)
    return combined


def toeplitz_matmul_kernel(mat_ref, x_ref, o_ref):
    # mat_ref: (dim, dim) f32 — folded Toeplitz product (tiny, same every step)
    # x_ref:   (dim, tn)  f32 — one lane-dense batch tile
    # o_ref:   (dim, tn)  f32
    o_ref[...] = jnp.dot(mat_ref[...], x_ref[...],
                         preferred_element_type=jnp.float32).astype(o_ref.dtype)


def toeplitz_net_forward(mats, x, *, tn=32768, small_batch_bypass=True,
                         small_batch_cols=4096):
    """mats: (n_layers, dim, dim) f32, x: (dim, N) f32 -> (dim, N) f32."""
    n_layers, dim, _ = mats.shape
    _, n = x.shape

    combined = fold_layers(mats.astype(jnp.float32))

    if small_batch_bypass and n < small_batch_cols:
        # Pallas dispatch / padding overhead dominates at tiny N; let XLA fuse it.
        return jnp.dot(combined, x, preferred_element_type=jnp.float32).astype(x.dtype)

    # --- lane-dense batch tiling (tn always a multiple of 128) ---
    tn = max(128, (int(tn) // 128) * 128)
    # Cap so double-buffered in/out tiles stay well inside per-core VMEM
    # (v7x has only 64 MiB per TensorCore): ~16*dim*tn bytes pipelined.
    vmem_budget = 40 * 1024 * 1024
    tn_cap = max(128, (vmem_budget // (16 * dim)) // 128 * 128)
    tn = min(tn, tn_cap)
    # Don't pad beyond what the data actually needs.
    n128 = pl.cdiv(n, 128) * 128
    tn = min(tn, n128)

    n_pad = pl.cdiv(n, tn) * tn
    x_p = jnp.pad(x, ((0, 0), (0, n_pad - n))) if n_pad != n else x
    num_tiles = n_pad // tn

    # Double-buffered x + o tiles + folded matrix, with headroom.
    tile_bytes = 4 * dim * tn
    vmem_limit = int(min(48 * 1024 * 1024,
                         max(32 * 1024 * 1024, 6 * tile_bytes + (1 << 20))))

    out_p = pl.pallas_call(
        toeplitz_matmul_kernel,
        out_shape=jax.ShapeDtypeStruct((dim, n_pad), x.dtype),
        grid_spec=pltpu.PrefetchScalarGridSpec(
            num_scalar_prefetch=0,
            grid=(num_tiles,),
            in_specs=[
                # folded matrix: one tiny block, identical every grid step
                pl.BlockSpec((dim, dim), lambda b: (0, 0)),
                # one lane-dense activation tile per grid step
                pl.BlockSpec((dim, tn), lambda b: (0, b)),
            ],
            out_specs=pl.BlockSpec((dim, tn), lambda b: (0, b)),
        ),
        compiler_params=pltpu.CompilerParams(
            dimension_semantics=("parallel",),
            vmem_limit_bytes=vmem_limit,
        ),
    )(combined, x_p)

    return out_p[:, :n]


if __name__ == "__main__":
    dim, n_layers, batch = 16, 3, 8

    key = jax.random.PRNGKey(0)
    kd, kl, ku, kx, kx2 = jax.random.split(key, 5)

    # Deterministic synthetic parameters (shapes match ToeplitzBlock.__init__):
    #   diag: (1,), lower_diags: (dim-1,), upper_diags: (dim-1,)
    diag_p = 0.1 * jax.random.normal(kd, (n_layers, 1), dtype=jnp.float32)
    lower_p = 0.1 * jax.random.normal(kl, (n_layers, dim - 1), dtype=jnp.float32)
    upper_p = 0.1 * jax.random.normal(ku, (n_layers, dim - 1), dtype=jnp.float32)

    # block.diagonals() returns [diag + 1, lower_diags, upper_diags]
    mats = jnp.stack(
        [expand_toeplitz(diag_p[i] + 1.0, lower_p[i], upper_p[i])
         for i in range(n_layers)],
        axis=0,
    ).astype(jnp.float32)

    x = jax.random.normal(kx, (dim, batch), dtype=jnp.float32)

    # Force the Pallas path even at tiny batch so the kernel is exercised here.
    out = jax.block_until_ready(
        toeplitz_net_forward(mats, x, small_batch_bypass=False))
    assert out.shape == (dim, batch)

    # Pure-f32 sequential reference (original PyTorch ToeplitzNet semantics).
    ref = x
    for i in range(n_layers):
        ref = mats[i] @ ref
    assert jnp.allclose(out, ref, atol=1e-4, rtol=1e-4), "kernel mismatch vs f32 reference"

    # Second shape: non-multiple-of-128 batch exercising padding + a multi-tile grid.
    x2 = jax.random.normal(kx2, (dim, 300), dtype=jnp.float32)
    out2 = jax.block_until_ready(
        toeplitz_net_forward(mats, x2, tn=128, small_batch_bypass=False))
    ref2 = x2
    for i in range(n_layers):
        ref2 = mats[i] @ ref2
    assert out2.shape == (dim, 300)
    assert jnp.allclose(out2, ref2, atol=1e-4, rtol=1e-4), "multi-tile kernel mismatch"

    # Small-batch bypass path (plain XLA dot on the folded matrix).
    out_bypass = jax.block_until_ready(toeplitz_net_forward(mats, x))
    assert jnp.allclose(out_bypass, ref, atol=1e-4, rtol=1e-4), "bypass mismatch"

    print("KERNEL_OK")
</pallas_src>

<mosaic_0001>
module attributes {stable_mosaic.version = 11 : i64} {
  func.func @toeplitz_matmul_kernel(%arg0: i32, %arg1: memref<16x16xf32, #tpu.memory_space<vmem>>, %arg2: memref<16x128xf32, #tpu.memory_space<vmem>>, %arg3: memref<16x128xf32, #tpu.memory_space<vmem>>) attributes {dimension_semantics = [#tpu.dimension_semantics<parallel>], iteration_bounds = array<i64: 1>, scalar_prefetch = 0 : i64, scratch_operands = 0 : i64, tpu.core_type = #tpu.core_type<tc>, window_params = [{pipeline_mode = #tpu.pipeline_mode<synchronous>, transform_indices = @transform_0, window_bounds = array<i64: 16, 16>}, {transform_indices = @transform_1, window_bounds = array<i64: 16, 128>}, {transform_indices = @transform_2, window_bounds = array<i64: 16, 128>}]} {
    %c0 = arith.constant 0 : index
    %c0_0 = arith.constant 0 : index
    %0 = vector.load %arg1[%c0, %c0_0] : memref<16x16xf32, #tpu.memory_space<vmem>>, vector<16x16xf32>
    %c0_1 = arith.constant 0 : index
    %c0_2 = arith.constant 0 : index
    %1 = vector.load %arg2[%c0_1, %c0_2] : memref<16x128xf32, #tpu.memory_space<vmem>>, vector<16x128xf32>
    %cst = arith.constant dense<0.000000e+00> : vector<16x128xf32>
    %2 = tpu.matmul %0, %1, %cst {dimension_numbers = #tpu.dot_dimension_numbers<[1], [0], [0], [1], [0, 0, 1, 1], [], []>} : vector<16x16xf32>, vector<16x128xf32>, vector<16x128xf32> -> vector<16x128xf32>
    %c0_3 = arith.constant 0 : index
    %c0_4 = arith.constant 0 : index
    %3 = vector.load %arg3[%c0_3, %c0_4] : memref<16x128xf32, #tpu.memory_space<vmem>>, vector<16x128xf32>
    tpu.vector_store %arg3[%c0_3, %c0_4], %2 {strides = array<i32>} : memref<16x128xf32, #tpu.memory_space<vmem>>, vector<16x128xf32>,
    return
  }
  func.func @transform_0(%arg0: i32) -> (i32, i32) {
    %c0_i32 = arith.constant 0 : i32
    %c0_i32_0 = arith.constant 0 : i32
    %c0_i32_1 = arith.constant 0 : i32
    return %c0_i32, %c0_i32_0 : i32, i32
  }
  func.func @transform_1(%arg0: i32) -> (i32, i32) {
    %c0_i32 = arith.constant 0 : i32
    %c0_i32_0 = arith.constant 0 : i32
    return %c0_i32, %arg0 : i32, i32
  }
  func.func @transform_2(%arg0: i32) -> (i32, i32) {
    %c0_i32 = arith.constant 0 : i32
    %c0_i32_0 = arith.constant 0 : i32
    return %c0_i32, %arg0 : i32, i32
  }
}

</mosaic_0001>

<bundles_post_ra>
// kernel: tpu_custom_call.1
= control target key start
LH: loop header
LB: loop body
LE: loop exit
PB: predicated region body
PF: predicated region fallthrough
CT: control target
= control target key end

     0   :  { %7 = vsyncpa [#allocation3], 0  ;;  %s268_s0 = inlined_call_operand.hbm [shape: f32[16,16], index: 0, kind: input, shape index: {}]   ;;  %s269_s1 = inlined_call_operand.hbm [shape: f32[16,128], index: 1, kind: input, shape index: {}]   ;;  %s270_s2 = inlined_call_operand.hbm [shape: f32[16,128], index: 2, kind: output, shape index: {}]  }
   0x1   :  { %8 = vsyncpa [#allocation6], 0 }
   0x2   :  { %9 = vsyncpa [#allocation4], 0  ;;  %s230_s9 = smov [#allocation2]  }
   0x3   :  { %s15_s10 = sshll.u32 %s230_s9, 4  ;;  %s16_s10 = int_to_ptr.vmem [resolvable:$true] %s15_s10 }
   0x4   :  { %s172_s11 = scalar_lea.vmem %s16_s10, 256  ;;  %p177_p1 = scmp.lt.s32.totalorder %s16_s10, %s16_s10 }
   0x5   :  { %p173_p0 = scmp.ne.s32.totalorder %s16_s10, %s172_s11  ;;  %p178_p2 = scmp.lt.s32.totalorder %s172_s11, %s172_s11 }
   0x7   :  { %p179_p3 = por %p178_p2, %p177_p1 }
   0x9   :  { %p180_p4 = pnand %p179_p3, %p173_p0 }
   0xb   :  { %183 = shalt.err (!%p180_p4)
}
   0xc   :  { %s231_s12 = smov 128   ;;  %s232_s13 = smov 8  }
   0xd   :  { %21 = dma.hbm_to_vmem [thread:$0]  %s268_s0, 256, %s16_s10, [#allocation3], %s231_s12, %s231_s12, %s232_s13  }
   0xe   :  { %s233_s16 = smov [#allocation5]  }
   0xf   :  { %s27_s17 = sshll.u32 %s233_s16, 4  ;;  %s28_s17 = int_to_ptr.vmem [resolvable:$true] %s27_s17 }
  0x10   :  { %s192_s18 = scalar_lea.vmem %s28_s17, 256  ;;  %p197_p6 = scmp.lt.s32.totalorder %s28_s17, %s28_s17 }
  0x11   :  { %p193_p5 = scmp.ne.s32.totalorder %s28_s17, %s192_s18  ;;  %p198_p7 = scmp.lt.s32.totalorder %s192_s18, %s192_s18 }
  0x13   :  { %p199_p8 = por %p198_p7, %p197_p6 }
  0x15   :  { %p200_p9 = pnand %p199_p8, %p193_p5 }
  0x17   :  { %203 = shalt.err (!%p200_p9)
}
  0x18   :  { %33 = dma.hbm_to_vmem [thread:$0]  %s269_s1, 256, %s28_s17, [#allocation6], %s231_s12, %s231_s12, %s232_s13  }
  0x19   :  { %224 = dma.done.wait [#allocation3], 256  }
  0x1a   :  { %225 = vsyncadd [#allocation3], 4294967040 }
  0x1b   :  { %226 = dma.done.wait [#allocation6], 256  }
  0x1c   :  { %227 = vsyncadd [#allocation6], 4294967040  ;;  %vm44_vm0 = vcmask 130048   ;;  %v43_v0 = vld [vmem:[#allocation5 + $0x8] sm:$0xff]  ;;  %v42_v1 = vld [vmem:[#allocation5] sm:$0xff]  ;;  %s234_s0 = smov [#allocation7]  }
  0x1d   :  { %v40_v2 = vld [vmem:[#allocation2] sm:$0xff]  ;;  %152 = vmatprep.subr.mxu0 %v43_v0  ;;  %v41_v3 = vld [vmem:[#allocation2 + $0x8] sm:$0xff]  ;;  %s133_s21 = sshll.u32 %s234_s0, 4  ;;  %s134_s21 = int_to_ptr.vmem [resolvable:$true] %s133_s21 }
  0x1e   :  { %156 = vmatprep.mubr.msk.f32.mxu0 %vm44_vm0, %v40_v2  ;;  %153 = vmatpush3.msra.mxu0 %v43_v0  ;;  %s204_s1 = scalar_lea.vmem %s134_s21, 256  ;;  %p209_p11 = scmp.lt.s32.totalorder %s134_s21, %s134_s21 }
  0x1f   :  { %154 = vmatprep.subr.mxu0 %v42_v1  ;;  %p205_p10 = scmp.ne.s32.totalorder %s134_s21, %s204_s1  ;;  %p210_p12 = scmp.lt.s32.totalorder %s204_s1, %s204_s1 }
  0x20   :  { %155 = vmatpush3.msra.mxu0 %v42_v1 }
  0x21   :  { %157 = vmatmul.mubr.msk.f32.vlgmr.msra.gmra.mxu0 %vm44_vm0, %v41_v3  ;;  %p211_p13 = por %p210_p12, %p209_p11 }
  0x23   :  { %p212_p0 = pnand %p211_p13, %p205_p10 }
  0xe1   :  { %v158_v4 = vpop.f32.mrf.mxu0 }
  0xe2   :  { %127 = vst [vmem:[#allocation7 + $0x8] sm:$0xff] %v158_v4 }
  0xe3   :  { %v117_v5 = vpop.f32.mrf.mxu0 }
  0xe4   :  { %126 = vst [vmem:[#allocation7] sm:$0xff] %v117_v5 }
  0xe5   :  { %215 = shalt.err (!%p212_p0)
}
  0xe6   :  { %139 = dma.vmem_to_hbm [thread:$0]  %s134_s21, 256, %s270_s2, [#allocation4], %s231_s12, %s231_s12, %s232_s13  }
  0xe7   :  { %228 = dma.done.wait [#allocation4], 256  }
  0xe8   :  { %229 = vsyncadd [#allocation4], 4294967040 }
  0xe9   :  { %143 = vsyncpa [#allocation3], 1 }
  0xea   :  { %144 = vsyncpa [#allocation6], 1 }
  0xeb   :  { %145 = vsyncpa [#allocation4], 1 }

</bundles_post_ra>
